<compile_context>
chip_gen: v5e
topology: v5e:2x2
jax: 0.10.0
libtpu: 0.0.40
codegen_flags: <defaults>
</compile_context>

<pallas_src>
import functools
import math

import jax
import jax.numpy as jnp
from jax.experimental import pallas as pl
from jax.experimental.pallas import tpu as pltpu


def _gaussian_penalty_kernel(x_ref, p_ref, o_ref, *, q, d, inv_two_sigma_sq):
    # x_ref: (TB, q*d) contiguous block, batch rows on sublanes, q*dim on lanes
    # p_ref: (1, d)    reference point
    # o_ref: (TB, 1)   per-batch penalty
    p = p_ref[...].astype(jnp.float32)                          # (1, d)
    tb = x_ref.shape[0]
    # Track the running max of the squared distances; apply exp once at the end
    # (exp is monotone -> identical result, q x less EUP work, no (TB, q*d) pdf temp).
    max_sq = jnp.full((tb, 1), -jnp.inf, dtype=jnp.float32)
    for qi in range(q):                                         # q is small & static
        xw = x_ref[:, qi * d:(qi + 1) * d].astype(jnp.float32)  # (TB, d) lane window
        diff = xw - p                                           # f32 math: safe on v5e too
        max_sq = jnp.maximum(
            max_sq, jnp.sum(diff * diff, axis=-1, keepdims=True))
    o_ref[...] = jnp.exp(max_sq * inv_two_sigma_sq).astype(o_ref.dtype)


def _hw_params():
    """Generation-aware block target / VMEM limit / minimum grid length."""
    vmem_cap = 128 << 20                        # v5e/v6e physical VMEM (fallback)
    try:
        info = pltpu.get_tpu_info()
        vmem_cap = int(getattr(info, "vmem_capacity_bytes", vmem_cap))
    except Exception:                           # conservative fallback if query fails
        pass
    multi_tc = vmem_cap <= (64 << 20)           # v7x-class: 64 MiB VMEM/TC, 2 TensorCores
    target_block = 8 << 20                      # ~8 MiB per (double-buffered) input block
    vmem_limit = min(64 << 20, (vmem_cap * 3) // 4)   # 64 MiB on v5e/v6e, 48 MiB on v7x
    min_grid = 4 if multi_tc else 1             # >=2 pipelined steps per TC on v7x
    return target_block, vmem_limit, min_grid


def _pick_batch_tile(B, row_elems, itemsize, target_block_bytes, min_grid_steps):
    # VMEM footprint per batch row (last dim pads up to a multiple of 128 lanes).
    per_row_bytes = pl.cdiv(row_elems, 128) * 128 * itemsize
    tb = max(int(target_block_bytes // max(per_row_bytes, 1)), 8)
    tb = tb // 8 * 8                            # (tb, 1) output block needs tb % 8 == 0
    tb = min(tb, B)
    if min_grid_steps > 1 and B > 8 * min_grid_steps:
        # Multi-TensorCore chip: make sure each core sees >= 2 pipelined grid steps.
        while pl.cdiv(B, tb) < min_grid_steps and tb > 8:
            tb = max(tb // 2 // 8 * 8, 8)
    return B if tb >= B else tb


def gaussian_penalty(X, init_point, sigma, *, batch_tile=None):
    """X: (*batch_shape, q, dim); init_point: (1, dim) or (dim,); returns batch_shape."""
    *batch_shape, Q, D = X.shape
    B = math.prod(batch_shape) if batch_shape else 1
    QD = Q * D

    # Free layout plumbing (no HBM data movement): flatten leading batch dims and merge
    # (q, dim) into one contiguous lane axis.  X keeps its natural row-major HBM layout.
    Xf = jnp.reshape(X, (B, QD))
    p = jnp.reshape(init_point, (1, D)).astype(X.dtype)

    target_block, vmem_limit, min_grid = _hw_params()
    if batch_tile is None:
        tb = _pick_batch_tile(B, QD, X.dtype.itemsize, target_block, min_grid)
    else:
        tb = B if batch_tile >= B else max(int(batch_tile) // 8 * 8, 8)
    grid = pl.cdiv(B, tb)    # partial last block is fine: its output rows are dropped

    inv_two_sigma_sq = 1.0 / (2.0 * float(sigma) ** 2)
    kernel = functools.partial(
        _gaussian_penalty_kernel, q=Q, d=D, inv_two_sigma_sq=inv_two_sigma_sq)

    out = pl.pallas_call(
        kernel,
        out_shape=jax.ShapeDtypeStruct((B, 1), X.dtype),
        grid_spec=pltpu.PrefetchScalarGridSpec(
            num_scalar_prefetch=0,
            grid=(grid,),
            in_specs=[
                pl.BlockSpec((tb, QD), lambda b: (b, 0)),   # one contiguous DMA per step
                pl.BlockSpec((1, D), lambda b: (0, 0)),     # constant block: fetched once
            ],
            out_specs=pl.BlockSpec((tb, 1), lambda b: (b, 0)),
        ),
        compiler_params=pltpu.CompilerParams(
            dimension_semantics=("parallel",),
            vmem_limit_bytes=int(vmem_limit),
        ),
    )(Xf, p)

    return jnp.reshape(out[:, 0], tuple(batch_shape))


if __name__ == "__main__":
    key = jax.random.PRNGKey(0)
    k1, k2 = jax.random.split(key)

    batch, q, dim = 2, 8, 16
    X = jax.random.normal(k1, (batch, q, dim), dtype=jnp.float32)
    init_point = jax.random.normal(k2, (1, dim), dtype=jnp.float32)
    sigma = 2.0

    result = gaussian_penalty(X, init_point, sigma)
    jax.block_until_ready(result)

    # Pure-JAX reference (matches the torch module's formula exactly).
    sq_diff = jnp.linalg.norm(X - init_point, axis=-1) ** 2
    ref = jnp.max(jnp.exp(sq_diff / 2.0 / sigma ** 2), axis=-1)
    assert result.shape == (batch,)
    assert jnp.allclose(result, ref, rtol=1e-5, atol=1e-5)

    print("KERNEL_OK")
</pallas_src>

<mosaic_0001>
module attributes {stable_mosaic.version = 11 : i64} {
  func.func @_gaussian_penalty_kernel(%arg0: i32, %arg1: memref<2x128xf32, #tpu.memory_space<vmem>>, %arg2: memref<1x16xf32, #tpu.memory_space<vmem>>, %arg3: memref<2x1xf32, #tpu.memory_space<vmem>>) attributes {dimension_semantics = [#tpu.dimension_semantics<parallel>], iteration_bounds = array<i64: 1>, scalar_prefetch = 0 : i64, scratch_operands = 0 : i64, tpu.core_type = #tpu.core_type<tc>, window_params = [{transform_indices = @transform_0, window_bounds = array<i64: 2, 128>}, {pipeline_mode = #tpu.pipeline_mode<synchronous>, transform_indices = @transform_1, window_bounds = array<i64: 1, 16>}, {transform_indices = @transform_2, window_bounds = array<i64: 2, 1>}]} {
    %c0 = arith.constant 0 : index
    %c0_0 = arith.constant 0 : index
    %0 = vector.load %arg2[%c0, %c0_0] : memref<1x16xf32, #tpu.memory_space<vmem>>, vector<1x16xf32>
    %cst = arith.constant 0xFF800000 : f32
    %1 = vector.broadcast %cst : f32 to vector<2x1xf32>
    %c0_1 = arith.constant 0 : index
    %c0_2 = arith.constant 0 : index
    %2 = vector.load %arg1[%c0_1, %c0_2] : memref<2x128xf32, #tpu.memory_space<vmem>>, vector<2x16xf32>
    %3 = vector.broadcast %0 : vector<1x16xf32> to vector<2x16xf32>
    %4 = arith.subf %2, %3 : vector<2x16xf32>
    %5 = arith.mulf %4, %4 : vector<2x16xf32>
    %cst_3 = arith.constant dense<0.000000e+00> : vector<2xf32>
    %6 = vector.multi_reduction <add>, %5, %cst_3 [1] : vector<2x16xf32> to vector<2xf32>
    %7 = vector.shape_cast %6 : vector<2xf32> to vector<2x1xf32>
    %8 = arith.maximumf %1, %7 : vector<2x1xf32>
    %c0_4 = arith.constant 0 : index
    %c16 = arith.constant 16 : index
    %9 = vector.load %arg1[%c0_4, %c16] : memref<2x128xf32, #tpu.memory_space<vmem>>, vector<2x16xf32>
    %10 = vector.broadcast %0 : vector<1x16xf32> to vector<2x16xf32>
    %11 = arith.subf %9, %10 : vector<2x16xf32>
    %12 = arith.mulf %11, %11 : vector<2x16xf32>
    %cst_5 = arith.constant dense<0.000000e+00> : vector<2xf32>
    %13 = vector.multi_reduction <add>, %12, %cst_5 [1] : vector<2x16xf32> to vector<2xf32>
    %14 = vector.shape_cast %13 : vector<2xf32> to vector<2x1xf32>
    %15 = arith.maximumf %8, %14 : vector<2x1xf32>
    %c0_6 = arith.constant 0 : index
    %c32 = arith.constant 32 : index
    %16 = vector.load %arg1[%c0_6, %c32] : memref<2x128xf32, #tpu.memory_space<vmem>>, vector<2x16xf32>
    %17 = vector.broadcast %0 : vector<1x16xf32> to vector<2x16xf32>
    %18 = arith.subf %16, %17 : vector<2x16xf32>
    %19 = arith.mulf %18, %18 : vector<2x16xf32>
    %cst_7 = arith.constant dense<0.000000e+00> : vector<2xf32>
    %20 = vector.multi_reduction <add>, %19, %cst_7 [1] : vector<2x16xf32> to vector<2xf32>
    %21 = vector.shape_cast %20 : vector<2xf32> to vector<2x1xf32>
    %22 = arith.maximumf %15, %21 : vector<2x1xf32>
    %c0_8 = arith.constant 0 : index
    %c48 = arith.constant 48 : index
    %23 = vector.load %arg1[%c0_8, %c48] : memref<2x128xf32, #tpu.memory_space<vmem>>, vector<2x16xf32>
    %24 = vector.broadcast %0 : vector<1x16xf32> to vector<2x16xf32>
    %25 = arith.subf %23, %24 : vector<2x16xf32>
    %26 = arith.mulf %25, %25 : vector<2x16xf32>
    %cst_9 = arith.constant dense<0.000000e+00> : vector<2xf32>
    %27 = vector.multi_reduction <add>, %26, %cst_9 [1] : vector<2x16xf32> to vector<2xf32>
    %28 = vector.shape_cast %27 : vector<2xf32> to vector<2x1xf32>
    %29 = arith.maximumf %22, %28 : vector<2x1xf32>
    %c0_10 = arith.constant 0 : index
    %c64 = arith.constant 64 : index
    %30 = vector.load %arg1[%c0_10, %c64] : memref<2x128xf32, #tpu.memory_space<vmem>>, vector<2x16xf32>
    %31 = vector.broadcast %0 : vector<1x16xf32> to vector<2x16xf32>
    %32 = arith.subf %30, %31 : vector<2x16xf32>
    %33 = arith.mulf %32, %32 : vector<2x16xf32>
    %cst_11 = arith.constant dense<0.000000e+00> : vector<2xf32>
    %34 = vector.multi_reduction <add>, %33, %cst_11 [1] : vector<2x16xf32> to vector<2xf32>
    %35 = vector.shape_cast %34 : vector<2xf32> to vector<2x1xf32>
    %36 = arith.maximumf %29, %35 : vector<2x1xf32>
    %c0_12 = arith.constant 0 : index
    %c80 = arith.constant 80 : index
    %37 = vector.load %arg1[%c0_12, %c80] : memref<2x128xf32, #tpu.memory_space<vmem>>, vector<2x16xf32>
    %38 = vector.broadcast %0 : vector<1x16xf32> to vector<2x16xf32>
    %39 = arith.subf %37, %38 : vector<2x16xf32>
    %40 = arith.mulf %39, %39 : vector<2x16xf32>
    %cst_13 = arith.constant dense<0.000000e+00> : vector<2xf32>
    %41 = vector.multi_reduction <add>, %40, %cst_13 [1] : vector<2x16xf32> to vector<2xf32>
    %42 = vector.shape_cast %41 : vector<2xf32> to vector<2x1xf32>
    %43 = arith.maximumf %36, %42 : vector<2x1xf32>
    %c0_14 = arith.constant 0 : index
    %c96 = arith.constant 96 : index
    %44 = vector.load %arg1[%c0_14, %c96] : memref<2x128xf32, #tpu.memory_space<vmem>>, vector<2x16xf32>
    %45 = vector.broadcast %0 : vector<1x16xf32> to vector<2x16xf32>
    %46 = arith.subf %44, %45 : vector<2x16xf32>
    %47 = arith.mulf %46, %46 : vector<2x16xf32>
    %cst_15 = arith.constant dense<0.000000e+00> : vector<2xf32>
    %48 = vector.multi_reduction <add>, %47, %cst_15 [1] : vector<2x16xf32> to vector<2xf32>
    %49 = vector.shape_cast %48 : vector<2xf32> to vector<2x1xf32>
    %50 = arith.maximumf %43, %49 : vector<2x1xf32>
    %c0_16 = arith.constant 0 : index
    %c112 = arith.constant 112 : index
    %51 = vector.load %arg1[%c0_16, %c112] : memref<2x128xf32, #tpu.memory_space<vmem>>, vector<2x16xf32>
    %52 = vector.broadcast %0 : vector<1x16xf32> to vector<2x16xf32>
    %53 = arith.subf %51, %52 : vector<2x16xf32>
    %54 = arith.mulf %53, %53 : vector<2x16xf32>
    %cst_17 = arith.constant dense<0.000000e+00> : vector<2xf32>
    %55 = vector.multi_reduction <add>, %54, %cst_17 [1] : vector<2x16xf32> to vector<2xf32>
    %56 = vector.shape_cast %55 : vector<2xf32> to vector<2x1xf32>
    %57 = arith.maximumf %50, %56 : vector<2x1xf32>
    %cst_18 = arith.constant 1.250000e-01 : f32
    %58 = vector.broadcast %cst_18 : f32 to vector<2x1xf32>
    %59 = arith.mulf %57, %58 : vector<2x1xf32>
    %60 = math.exp %59 : vector<2x1xf32>
    %c0_19 = arith.constant 0 : index
    %c0_20 = arith.constant 0 : index
    %61 = vector.load %arg3[%c0_19, %c0_20] : memref<2x1xf32, #tpu.memory_space<vmem>>, vector<2x1xf32>
    tpu.vector_store %arg3[%c0_19, %c0_20], %60 {strides = array<i32>} : memref<2x1xf32, #tpu.memory_space<vmem>>, vector<2x1xf32>,
    return
  }
  func.func @transform_0(%arg0: i32) -> (i32, i32) {
    %c0_i32 = arith.constant 0 : i32
    %c0_i32_0 = arith.constant 0 : i32
    return %arg0, %c0_i32 : i32, i32
  }
  func.func @transform_1(%arg0: i32) -> (i32, i32) {
    %c0_i32 = arith.constant 0 : i32
    %c0_i32_0 = arith.constant 0 : i32
    %c0_i32_1 = arith.constant 0 : i32
    return %c0_i32, %c0_i32_0 : i32, i32
  }
  func.func @transform_2(%arg0: i32) -> (i32, i32) {
    %c0_i32 = arith.constant 0 : i32
    %c0_i32_0 = arith.constant 0 : i32
    return %arg0, %c0_i32 : i32, i32
  }
}

</mosaic_0001>

<bundles_post_ra>
// kernel: tpu_custom_call.1
= control target key start
LH: loop header
LB: loop body
LE: loop exit
PB: predicated region body
PF: predicated region fallthrough
CT: control target
= control target key end

     0   :  { %7 = vsyncpa [#allocation3], 0  ;;  %s263_s0 = inlined_call_operand.hbm [shape: f32[2,128], index: 0, kind: input, shape index: {}]   ;;  %s264_s1 = inlined_call_operand.hbm [shape: f32[1,16], index: 1, kind: input, shape index: {}]   ;;  %s265_s2 = inlined_call_operand.vmem [shape: f32[2,1], index: 2, kind: output, shape index: {}]  }
   0x1   :  { %s14_s11 = sshll.u32 %s263_s0, 4  ;;  %s15_s11 = int_to_ptr.hbm [resolvable:$true] %s14_s11 }
   0x2   :  { %8 = vsyncpa [#allocation5], 0  ;;  %s216_s12 = smov [#allocation2]   ;;  %s25_s16 = sshll.u32 %s264_s1, 4  ;;  %s26_s16 = int_to_ptr.hbm [resolvable:$true] %s25_s16 }
   0x3   :  { %s16_s13 = sshll.u32 %s216_s12, 4  ;;  %s217_s17 = smov [#allocation4]   ;;  %s17_s13 = int_to_ptr.vmem [resolvable:$true] %s16_s13 }
   0x4   :  { %19 = dma.hbm_to_vmem [thread:$0]  %s15_s11, 32, %s17_s13, [#allocation3]  }
   0x5   :  { %s27_s18 = sshll.u32 %s217_s17, 4  ;;  %s28_s18 = int_to_ptr.vmem [resolvable:$true] %s27_s18 }
   0x6   :  { %30 = dma.hbm_to_vmem [thread:$0]  %s26_s16, 16, %s28_s18, [#allocation5]  }
   0x7   :  { %212 = dma.done.wait [#allocation3], 32  }
   0x8   :  { %213 = vsyncadd [#allocation3], 4294967264 }
   0x9   :  { %214 = dma.done.wait [#allocation5], 16  }
   0xa   :  { %215 = vsyncadd [#allocation5], 4294967280  ;;  %v40_v0 = vld [vmem:[#allocation2] sm:$0x3]  ;;  %v161_v1 = vld [vmem:[#allocation4] ss:$0 sm:$0xff] }
   0xb   :  { %v44_v2 = vsub.f32 %v40_v0, %v161_v1  ;;  %s218_s0 = smov 32   ;;  %vm46_vm0 = vcmask 123904   ;;  %s219_s1 = smov 48   ;;  %vm144_vm1 = vcmask 1024  }
   0xc   :  { %63 = vrot.lane.b32.xlu2 %v161_v1, %s218_s0  ;;  %s220_s19 = smov 64   ;;  %s221_s20 = smov 80  }
   0xd   :  { %v45_v3 = vmul.f32 %v44_v2, %v44_v2  ;;  %s222_s21 = smov 16   ;;  %s223_s22 = smov 112  }
   0xe   :  { %s224_s23 = smov 96  }
   0xf   :  { %v47_v4 = vsel %vm46_vm0, %v45_v3, 0.0 }
  0x10   :  { %48 = vadd.xlane.f32.xlu0 %v47_v4 }
  0x14   :  { %76 = vrot.lane.b32.xlu2 %v161_v1, %s219_s1 }
  0x1c   :  { %89 = vrot.lane.b32.xlu2 %v161_v1, %s220_s19 }
  0x24   :  { %102 = vrot.lane.b32.xlu2 %v161_v1, %s221_s20  ;;  %50 = vrot.lane.b32.xlu0 %v161_v1, %s222_s21 }
  0x2c   :  { %128 = vrot.lane.b32.xlu2 %v161_v1, %s223_s22  ;;  %115 = vrot.lane.b32.xlu0 %v161_v1, %s224_s23 }
  0x66   :  { %v64_v5 = vpop.permute.xlu2 %63 }
  0x67   :  { %v66_v6 = vsub.f32 %v40_v0, %v64_v5 }
  0x69   :  { %v67_v7 = vmul.f32 %v66_v6, %v66_v6 }
  0x6b   :  { %69 = vrot.lane.b32.xlu0 %v67_v7, %s224_s23 }
  0x6e   :  { %v77_v8 = vpop.permute.xlu2 %76 }
  0x6f   :  { %v79_v9 = vsub.f32 %v40_v0, %v77_v8 }
  0x71   :  { %v80_v10 = vmul.f32 %v79_v9, %v79_v9 }
  0x73   :  { %82 = vrot.lane.b32.xlu0 %v80_v10, %s221_s20 }
  0x76   :  { %v90_v11 = vpop.permute.xlu2 %89 }
  0x77   :  { %v92_v19 = vsub.f32 %v40_v0, %v90_v11 }
  0x79   :  { %v93_v23 = vmul.f32 %v92_v19, %v92_v19 }
  0x7e   :  { %v103_v12 = vpop.permute.xlu2 %102 }
  0x7f   :  { %v105_v13 = vsub.f32 %v40_v0, %v103_v12 }
  0x81   :  { %v106_v14 = vmul.f32 %v105_v13, %v105_v13 }
  0x83   :  { %108 = vrot.lane.b32.xlu0 %v106_v14, %s219_s1  ;;  %v49_v15 = vpop.xlane.xlu0 %48 }
  0x86   :  { %v129_v22 = vpop.permute.xlu2 %128 }
  0x87   :  { %v131_v25 = vsub.f32 %v40_v0, %v129_v22 }
  0x89   :  { %v132_v26 = vmul.f32 %v131_v25, %v131_v25 }
  0x96   :  { %v51_v16 = vpop.permute.xlu0 %50 }
  0x97   :  { %v53_v17 = vsub.f32 %v40_v0, %v51_v16 }
  0x99   :  { %v54_v18 = vmul.f32 %v53_v17, %v53_v17 }
  0x9b   :  { %56 = vrot.lane.b32.xlu1 %v54_v18, %s223_s22 }
  0x9e   :  { %v116_v20 = vpop.permute.xlu0 %115 }
  0x9f   :  { %v118_v21 = vsub.f32 %v40_v0, %v116_v20 }
  0xa1   :  { %v119_v24 = vmul.f32 %v118_v21, %v118_v21 }
  0xa3   :  { %95 = vrot.lane.b32.xlu1 %v93_v23, %s220_s19  ;;  %121 = vrot.lane.b32.xlu0 %v119_v24, %s218_s0 }
  0xab   :  { %134 = vrot.lane.b32.xlu0 %v132_v26, %s222_s21 }
  0xdd   :  { %v70_v27 = vpop.permute.xlu0 %69 }
  0xde   :  { %v72_v28 = vsel %vm46_vm0, %v70_v27, 0.0 }
  0xdf   :  { %73 = vadd.xlane.f32.xlu2 %v72_v28 }
  0xe5   :  { %v83_v29 = vpop.permute.xlu0 %82 }
  0xe6   :  { %v85_v37 = vsel %vm46_vm0, %v83_v29, 0.0 }
  0xf5   :  { %v109_v30 = vpop.permute.xlu0 %108 }
  0xf6   :  { %v111_v31 = vsel %vm46_vm0, %v109_v30, 0.0 }
  0xf7   :  { %112 = vadd.xlane.f32.xlu2 %v111_v31 }
 0x10d   :  { %v57_v32 = vpop.permute.xlu1 %56 }
 0x10e   :  { %v59_v33 = vsel %vm46_vm0, %v57_v32, 0.0 }
 0x10f   :  { %60 = vadd.xlane.f32.xlu1 %v59_v33 }
 0x115   :  { %v96_v34 = vpop.permute.xlu1 %95  ;;  %v122_v35 = vpop.permute.xlu0 %121 }
 0x116   :  { %v98_v36 = vsel %vm46_vm0, %v96_v34, 0.0  ;;  %v124_v38 = vsel %vm46_vm0, %v122_v35, 0.0 }
 0x117   :  { %99 = vadd.xlane.f32.xlu0 %v98_v36  ;;  %86 = vadd.xlane.f32.xlu1 %v85_v37 }
 0x118   :  { %125 = vadd.xlane.f32.xlu2 %v124_v38 }
 0x11d   :  { %v135_v39 = vpop.permute.xlu0 %134 }
 0x11e   :  { %v137_v40 = vsel %vm46_vm0, %v135_v39, 0.0 }
 0x120   :  { %138 = vadd.xlane.f32.xlu2 %v137_v40 }
 0x152   :  { %v74_v41 = vpop.xlane.xlu2 %73 }
 0x16a   :  { %v113_v42 = vpop.xlane.xlu2 %112 }
 0x182   :  { %v61_v43 = vpop.xlane.xlu1 %60 }
 0x183   :  { %v62_v44 = vmax.f32 %v49_v15, %v61_v43 }
 0x185   :  { %v75_v45 = vmax.f32 %v62_v44, %v74_v41 }
 0x18a   :  { %v87_v46 = vpop.xlane.xlu1 %86  ;;  %v100_v49 = vpop.xlane.xlu0 %99 }
 0x18b   :  { %v88_v47 = vmax.f32 %v75_v45, %v87_v46  ;;  %v126_v48 = vpop.xlane.xlu2 %125 }
 0x18d   :  { %v101_v50 = vmax.f32 %v88_v47, %v100_v49 }
 0x18f   :  { %v114_v51 = vmax.f32 %v101_v50, %v113_v42 }
 0x191   :  { %v127_v52 = vmax.f32 %v114_v51, %v126_v48 }
 0x193   :  { %v139_v53 = vpop.xlane.xlu2 %138 }
 0x194   :  { %v140_v54 = vmax.f32 %v127_v52, %v139_v53 }
 0x196   :  { %v141_v55 = vmul.f32 0.125, %v140_v54 }
 0x198   :  { %v142_v56 = vmul.f32 1.442695, %v141_v55 }
 0x19a   :  { %162 = vpow2.f32 %v142_v56 }
 0x1a0   :  { %v163_v57 = vpop.eup %162 }
 0x1a1   :  { %145 = vst.msk [vmem:[%s265_s2] sm:$0x3] %vm144_vm1, %v163_v57 }
 0x1a2   :  { %150 = vsyncpa [#allocation3], 1 }
 0x1a3   :  { %151 = vsyncpa [#allocation5], 1 }

</bundles_post_ra>
